<compile_context>
chip_gen: v7x
topology: tpu7x:2x2x1
jax: 0.10.0
libtpu: 0.0.40
codegen_flags: <defaults>
</compile_context>

<pallas_src>
import jax
import jax.numpy as jnp
from jax.experimental import pallas as pl
from jax.experimental.pallas import tpu as pltpu  # noqa: F401  (TPU backend)

EMBED = 32
HEADS = 4
HEAD_DIM = EMBED // HEADS
SEQ = 8
BATCH = 2
HIDDEN = EMBED * 4
EPS = 1e-5  # PyTorch nn.LayerNorm default

# Row offsets of each parameter block inside the single packed (P_ROWS, 128) buffer.
_R_WQKV = 0                    # (EMBED, 3*EMBED) in lanes 0..95
_R_WO = _R_WQKV + EMBED        # (EMBED, EMBED)   in lanes 0..31
_R_W1 = _R_WO + EMBED          # (EMBED, HIDDEN)  full 128 lanes
_R_W2 = _R_W1 + EMBED          # (HIDDEN, EMBED)  in lanes 0..31
_R_VEC = _R_W2 + HIDDEN        # (8, 128) packed LN gains/biases + bo, b2, b1
P_ROWS = _R_VEC + 8            # 232


def _layernorm(h, gamma, beta):
    mu = jnp.mean(h, axis=-1, keepdims=True)
    var = jnp.mean((h - mu) ** 2, axis=-1, keepdims=True)
    return (h - mu) * jax.lax.rsqrt(var + EPS) * gamma + beta


def simple_block_kernel(x_ref, p_ref, out_ref):
    # x_ref : (B*S, E) = (16, 32) flattened activations
    # p_ref : (232, 128) packed parameters (see row offsets above)
    x = x_ref[...]

    # ---- unpack parameters: static, 8-aligned sublane / lane-0 sub-block loads ----
    wqkv = p_ref[_R_WQKV:_R_WQKV + EMBED, 0:3 * EMBED]   # (32, 96)  [Wq*scale | Wk | Wv]
    wo = p_ref[_R_WO:_R_WO + EMBED, 0:EMBED]             # (32, 32)
    w1 = p_ref[_R_W1:_R_W1 + EMBED, :]                   # (32, 128)
    w2 = p_ref[_R_W2:_R_W2 + HIDDEN, 0:EMBED]            # (128, 32)
    vec = p_ref[_R_VEC:_R_VEC + 8, :]                    # (8, 128) -- one vreg
    ln1_g = vec[0:1, :EMBED]
    ln1_b = vec[1:2, :EMBED]
    ln2_g = vec[2:3, :EMBED]
    ln2_b = vec[3:4, :EMBED]
    bo = vec[4:5, :EMBED]
    b2 = vec[5:6, :EMBED]
    b1 = vec[6:7, :]                                     # (1, 128)

    # ---- LayerNorm 1 (normalized value is also the attention residual base) ----
    h = _layernorm(x, ln1_g, ln1_b)                      # (16, 32)

    # ---- fused QKV projection (1/sqrt(head_dim) folded into Wq columns) ----
    qkv = jnp.dot(h, wqkv, preferred_element_type=jnp.float32)    # (16, 96)

    # ---- all-heads attention: single batched einsum pair over n = head*B + b ----
    def split_heads(col0):
        # (H*B, S, HD): head slices moved to the major axis via cheap
        # major-axis concatenation (leading-dim reshapes only, no lane-split relayout).
        return jnp.concatenate(
            [qkv[:, col0 + hd * HEAD_DIM: col0 + (hd + 1) * HEAD_DIM]
                 .reshape(BATCH, SEQ, HEAD_DIM) for hd in range(HEADS)],
            axis=0)

    q = split_heads(0)                                   # (8, 8, 8)
    k = split_heads(EMBED)
    v = split_heads(2 * EMBED)

    s = jnp.einsum('nqd,nkd->nqk', q, k, preferred_element_type=jnp.float32)
    s = s - jnp.max(s, axis=-1, keepdims=True)
    e = jnp.exp(s)
    p = e * pl.reciprocal(jnp.sum(e, axis=-1, keepdims=True), approx=False)
    o = jnp.einsum('nqk,nkd->nqd', p, v, preferred_element_type=jnp.float32)   # (8, 8, 8)

    # Re-assemble (B*S, E) context: per-head major-axis slice -> lane concat (head-major).
    ctx = jnp.concatenate(
        [o[hd * BATCH:(hd + 1) * BATCH].reshape(BATCH * SEQ, HEAD_DIM)
         for hd in range(HEADS)], axis=-1)               # (16, 32)

    # ---- fused output projection + residual (dropout == identity in eval) ----
    attn = jnp.dot(ctx, wo, preferred_element_type=jnp.float32) + bo
    x1 = h + attn

    # ---- LayerNorm 2 + MLP + residual ----
    h2 = _layernorm(x1, ln2_g, ln2_b)
    m = jnp.dot(h2, w1, preferred_element_type=jnp.float32) + b1
    m = jnp.maximum(m, 0.0)
    m = jnp.dot(m, w2, preferred_element_type=jnp.float32) + b2
    out_ref[...] = h2 + m


def pack_params(params):
    """Pack all weights and small vectors into one lane-dense (232, 128) buffer."""
    (ln1_g, ln1_b, wq, wk, wv, wo, bo, ln2_g, ln2_b, w1, b1, w2, b2) = params
    scale = 1.0 / jnp.sqrt(jnp.float32(HEAD_DIM))
    wqkv = jnp.concatenate([wq * scale, wk, wv], axis=1)           # (32, 96)

    def row_pad(a):  # pad lanes to 128
        return jnp.pad(a, ((0, 0), (0, HIDDEN - a.shape[1])))

    vecs = jnp.concatenate(
        [row_pad(ln1_g), row_pad(ln1_b), row_pad(ln2_g), row_pad(ln2_b),
         row_pad(bo), row_pad(b2), b1, jnp.zeros((1, HIDDEN), jnp.float32)],
        axis=0)                                                    # (8, 128)

    packed = jnp.concatenate(
        [row_pad(wqkv),     # rows   0.. 31
         row_pad(wo),       # rows  32.. 63
         w1,                # rows  64.. 95
         row_pad(w2),       # rows  96..223
         vecs],             # rows 224..231
        axis=0)                                                    # (232, 128)
    assert packed.shape == (P_ROWS, HIDDEN)
    return packed


def simple_block(x, params):
    B, S, E = x.shape
    packed = pack_params(params)                 # one-time host-side packing
    x_flat = x.reshape(B * S, E)                 # free XLA reshape outside the kernel
    out_flat = pl.pallas_call(
        simple_block_kernel,
        out_shape=jax.ShapeDtypeStruct((B * S, E), jnp.float32),
    )(x_flat, packed)
    return out_flat.reshape(B, S, E)


def reference_block(x, params):
    (ln1_g, ln1_b, wq, wk, wv, wo, bo, ln2_g, ln2_b, w1, b1, w2, b2) = params
    h = _layernorm(x, ln1_g[0], ln1_b[0])
    q = h @ wq
    k = h @ wk
    v = h @ wv
    B, S, E = x.shape
    qh = q.reshape(B, S, HEADS, HEAD_DIM).transpose(0, 2, 1, 3)
    kh = k.reshape(B, S, HEADS, HEAD_DIM).transpose(0, 2, 1, 3)
    vh = v.reshape(B, S, HEADS, HEAD_DIM).transpose(0, 2, 1, 3)
    scores = jnp.einsum("bhqd,bhkd->bhqk", qh, kh) / jnp.sqrt(jnp.float32(HEAD_DIM))
    p = jax.nn.softmax(scores, axis=-1)
    o = jnp.einsum("bhqk,bhkd->bhqd", p, vh).transpose(0, 2, 1, 3).reshape(B, S, E)
    attn = o @ wo + bo[0]
    x1 = h + attn
    h2 = _layernorm(x1, ln2_g[0], ln2_b[0])
    m = jnp.maximum(h2 @ w1 + b1[0], 0.0) @ w2 + b2[0]
    return h2 + m


def init_params(key):
    keys = jax.random.split(key, 8)
    scale = 0.05
    ln1_g = jnp.ones((1, EMBED), jnp.float32)
    ln1_b = jnp.zeros((1, EMBED), jnp.float32)
    ln2_g = jnp.ones((1, EMBED), jnp.float32)
    ln2_b = jnp.zeros((1, EMBED), jnp.float32)
    wq = scale * jax.random.normal(keys[0], (EMBED, EMBED), jnp.float32)
    wk = scale * jax.random.normal(keys[1], (EMBED, EMBED), jnp.float32)
    wv = scale * jax.random.normal(keys[2], (EMBED, EMBED), jnp.float32)
    wo = scale * jax.random.normal(keys[3], (EMBED, EMBED), jnp.float32)
    bo = scale * jax.random.normal(keys[4], (1, EMBED), jnp.float32)
    w1 = scale * jax.random.normal(keys[5], (EMBED, HIDDEN), jnp.float32)
    b1 = scale * jax.random.normal(keys[6], (1, HIDDEN), jnp.float32)
    w2 = scale * jax.random.normal(keys[7], (HIDDEN, EMBED), jnp.float32)
    b2 = jnp.zeros((1, EMBED), jnp.float32)
    return (ln1_g, ln1_b, wq, wk, wv, wo, bo, ln2_g, ln2_b, w1, b1, w2, b2)


if __name__ == "__main__":
    key = jax.random.PRNGKey(0)
    kx, kp = jax.random.split(key)
    x = jax.random.normal(kx, (BATCH, SEQ, EMBED), jnp.float32)
    params = init_params(kp)

    out = jax.block_until_ready(simple_block(x, params))
    ref = jax.block_until_ready(reference_block(x, params))

    assert out.shape == (BATCH, SEQ, EMBED)
    assert jnp.allclose(out, ref, atol=1e-4, rtol=1e-4), "mismatch vs reference"
    print("KERNEL_OK")
</pallas_src>

<mosaic_0001>
module attributes {stable_mosaic.version = 11 : i64} {
  func.func @simple_block_kernel(%arg0: memref<16x32xf32, #tpu.memory_space<vmem>>, %arg1: memref<232x128xf32, #tpu.memory_space<vmem>>, %arg2: memref<16x32xf32, #tpu.memory_space<vmem>>) attributes {dimension_semantics = [], scalar_prefetch = 0 : i64, scratch_operands = 0 : i64, tpu.core_type = #tpu.core_type<tc>} {
    %c0 = arith.constant 0 : index
    %c0_0 = arith.constant 0 : index
    %0 = vector.load %arg0[%c0, %c0_0] : memref<16x32xf32, #tpu.memory_space<vmem>>, vector<16x32xf32>
    %c0_1 = arith.constant 0 : index
    %c0_2 = arith.constant 0 : index
    %1 = vector.load %arg1[%c0_1, %c0_2] : memref<232x128xf32, #tpu.memory_space<vmem>>, vector<32x96xf32>
    %c32 = arith.constant 32 : index
    %c0_3 = arith.constant 0 : index
    %2 = vector.load %arg1[%c32, %c0_3] : memref<232x128xf32, #tpu.memory_space<vmem>>, vector<32x32xf32>
    %c64 = arith.constant 64 : index
    %c0_4 = arith.constant 0 : index
    %3 = vector.load %arg1[%c64, %c0_4] : memref<232x128xf32, #tpu.memory_space<vmem>>, vector<32x128xf32>
    %c96 = arith.constant 96 : index
    %c0_5 = arith.constant 0 : index
    %4 = vector.load %arg1[%c96, %c0_5] : memref<232x128xf32, #tpu.memory_space<vmem>>, vector<128x32xf32>
    %c224 = arith.constant 224 : index
    %c0_6 = arith.constant 0 : index
    %5 = vector.load %arg1[%c224, %c0_6] : memref<232x128xf32, #tpu.memory_space<vmem>>, vector<8x128xf32>
    %6 = vector.extract_strided_slice %5 {offsets = [0, 0], sizes = [1, 32], strides = [1, 1]} : vector<8x128xf32> to vector<1x32xf32>
    %7 = vector.extract_strided_slice %5 {offsets = [1, 0], sizes = [1, 32], strides = [1, 1]} : vector<8x128xf32> to vector<1x32xf32>
    %8 = vector.extract_strided_slice %5 {offsets = [2, 0], sizes = [1, 32], strides = [1, 1]} : vector<8x128xf32> to vector<1x32xf32>
    %9 = vector.extract_strided_slice %5 {offsets = [3, 0], sizes = [1, 32], strides = [1, 1]} : vector<8x128xf32> to vector<1x32xf32>
    %10 = vector.extract_strided_slice %5 {offsets = [4, 0], sizes = [1, 32], strides = [1, 1]} : vector<8x128xf32> to vector<1x32xf32>
    %11 = vector.extract_strided_slice %5 {offsets = [5, 0], sizes = [1, 32], strides = [1, 1]} : vector<8x128xf32> to vector<1x32xf32>
    %12 = vector.extract_strided_slice %5 {offsets = [6, 0], sizes = [1, 128], strides = [1, 1]} : vector<8x128xf32> to vector<1x128xf32>
    %cst = arith.constant dense<0.000000e+00> : vector<16xf32>
    %13 = vector.multi_reduction <add>, %0, %cst [1] : vector<16x32xf32> to vector<16xf32>
    %14 = vector.shape_cast %13 : vector<16xf32> to vector<16x1xf32>
    %cst_7 = arith.constant 3.200000e+01 : f32
    %15 = vector.broadcast %cst_7 : f32 to vector<16x1xf32>
    %16 = arith.divf %14, %15 : vector<16x1xf32>
    %17 = vector.broadcast %16 : vector<16x1xf32> to vector<16x32xf32>
    %18 = arith.subf %0, %17 : vector<16x32xf32>
    %19 = arith.mulf %18, %18 : vector<16x32xf32>
    %cst_8 = arith.constant dense<0.000000e+00> : vector<16xf32>
    %20 = vector.multi_reduction <add>, %19, %cst_8 [1] : vector<16x32xf32> to vector<16xf32>
    %21 = vector.shape_cast %20 : vector<16xf32> to vector<16x1xf32>
    %cst_9 = arith.constant 3.200000e+01 : f32
    %22 = vector.broadcast %cst_9 : f32 to vector<16x1xf32>
    %23 = arith.divf %21, %22 : vector<16x1xf32>
    %24 = vector.broadcast %16 : vector<16x1xf32> to vector<16x32xf32>
    %25 = arith.subf %0, %24 : vector<16x32xf32>
    %cst_10 = arith.constant 9.99999974E-6 : f32
    %26 = vector.broadcast %cst_10 : f32 to vector<16x1xf32>
    %27 = arith.addf %23, %26 : vector<16x1xf32>
    %28 = math.rsqrt %27 : vector<16x1xf32>
    %29 = vector.broadcast %28 : vector<16x1xf32> to vector<16x32xf32>
    %30 = arith.mulf %25, %29 : vector<16x32xf32>
    %31 = vector.broadcast %6 : vector<1x32xf32> to vector<16x32xf32>
    %32 = arith.mulf %30, %31 : vector<16x32xf32>
    %33 = vector.broadcast %7 : vector<1x32xf32> to vector<16x32xf32>
    %34 = arith.addf %32, %33 : vector<16x32xf32>
    %cst_11 = arith.constant dense<0.000000e+00> : vector<16x96xf32>
    %35 = tpu.matmul %34, %1, %cst_11 {dimension_numbers = #tpu.dot_dimension_numbers<[1], [0], [0], [1], [0, 0, 1, 1], [], []>} : vector<16x32xf32>, vector<32x96xf32>, vector<16x96xf32> -> vector<16x96xf32>
    %36 = vector.extract_strided_slice %35 {offsets = [0, 0], sizes = [16, 8], strides = [1, 1]} : vector<16x96xf32> to vector<16x8xf32>
    %37 = vector.shape_cast %36 : vector<16x8xf32> to vector<2x8x8xf32>
    %38 = vector.extract_strided_slice %35 {offsets = [0, 8], sizes = [16, 8], strides = [1, 1]} : vector<16x96xf32> to vector<16x8xf32>
    %39 = vector.shape_cast %38 : vector<16x8xf32> to vector<2x8x8xf32>
    %40 = vector.extract_strided_slice %35 {offsets = [0, 16], sizes = [16, 8], strides = [1, 1]} : vector<16x96xf32> to vector<16x8xf32>
    %41 = vector.shape_cast %40 : vector<16x8xf32> to vector<2x8x8xf32>
    %42 = vector.extract_strided_slice %35 {offsets = [0, 24], sizes = [16, 8], strides = [1, 1]} : vector<16x96xf32> to vector<16x8xf32>
    %43 = vector.shape_cast %42 : vector<16x8xf32> to vector<2x8x8xf32>
    %44 = tpu.concatenate %37, %39, %41, %43 in 0 : vector<2x8x8xf32>, vector<2x8x8xf32>, vector<2x8x8xf32>, vector<2x8x8xf32> -> vector<8x8x8xf32>
    %45 = vector.extract_strided_slice %35 {offsets = [0, 32], sizes = [16, 8], strides = [1, 1]} : vector<16x96xf32> to vector<16x8xf32>
    %46 = vector.shape_cast %45 : vector<16x8xf32> to vector<2x8x8xf32>
    %47 = vector.extract_strided_slice %35 {offsets = [0, 40], sizes = [16, 8], strides = [1, 1]} : vector<16x96xf32> to vector<16x8xf32>
    %48 = vector.shape_cast %47 : vector<16x8xf32> to vector<2x8x8xf32>
    %49 = vector.extract_strided_slice %35 {offsets = [0, 48], sizes = [16, 8], strides = [1, 1]} : vector<16x96xf32> to vector<16x8xf32>
    %50 = vector.shape_cast %49 : vector<16x8xf32> to vector<2x8x8xf32>
    %51 = vector.extract_strided_slice %35 {offsets = [0, 56], sizes = [16, 8], strides = [1, 1]} : vector<16x96xf32> to vector<16x8xf32>
    %52 = vector.shape_cast %51 : vector<16x8xf32> to vector<2x8x8xf32>
    %53 = tpu.concatenate %46, %48, %50, %52 in 0 : vector<2x8x8xf32>, vector<2x8x8xf32>, vector<2x8x8xf32>, vector<2x8x8xf32> -> vector<8x8x8xf32>
    %54 = vector.extract_strided_slice %35 {offsets = [0, 64], sizes = [16, 8], strides = [1, 1]} : vector<16x96xf32> to vector<16x8xf32>
    %55 = vector.shape_cast %54 : vector<16x8xf32> to vector<2x8x8xf32>
    %56 = vector.extract_strided_slice %35 {offsets = [0, 72], sizes = [16, 8], strides = [1, 1]} : vector<16x96xf32> to vector<16x8xf32>
    %57 = vector.shape_cast %56 : vector<16x8xf32> to vector<2x8x8xf32>
    %58 = vector.extract_strided_slice %35 {offsets = [0, 80], sizes = [16, 8], strides = [1, 1]} : vector<16x96xf32> to vector<16x8xf32>
    %59 = vector.shape_cast %58 : vector<16x8xf32> to vector<2x8x8xf32>
    %60 = vector.extract_strided_slice %35 {offsets = [0, 88], sizes = [16, 8], strides = [1, 1]} : vector<16x96xf32> to vector<16x8xf32>
    %61 = vector.shape_cast %60 : vector<16x8xf32> to vector<2x8x8xf32>
    %62 = tpu.concatenate %55, %57, %59, %61 in 0 : vector<2x8x8xf32>, vector<2x8x8xf32>, vector<2x8x8xf32>, vector<2x8x8xf32> -> vector<8x8x8xf32>
    "tpu.trace_start"() <{level = 10 : i32, message = "nqd,nkd->nqk"}> : () -> ()
    %cst_12 = arith.constant dense<0.000000e+00> : vector<8x8x8xf32>
    %63 = tpu.matmul %44, %53, %cst_12 {dimension_numbers = #tpu.dot_dimension_numbers<[2], [2], [1], [1], [0, 0, 0, 1, 1, 1], [0], [0]>} : vector<8x8x8xf32>, vector<8x8x8xf32>, vector<8x8x8xf32> -> vector<8x8x8xf32>
    "tpu.trace_stop"() : () -> ()
    %cst_13 = arith.constant dense<0xFF800000> : vector<8x8xf32>
    %64 = vector.multi_reduction <maximumf>, %63, %cst_13 [2] : vector<8x8x8xf32> to vector<8x8xf32>
    %65 = vector.shape_cast %64 : vector<8x8xf32> to vector<8x8x1xf32>
    %66 = vector.broadcast %65 : vector<8x8x1xf32> to vector<8x8x8xf32>
    %67 = arith.subf %63, %66 : vector<8x8x8xf32>
    %68 = math.exp %67 : vector<8x8x8xf32>
    %cst_14 = arith.constant dense<0.000000e+00> : vector<8x8xf32>
    %69 = vector.multi_reduction <add>, %68, %cst_14 [2] : vector<8x8x8xf32> to vector<8x8xf32>
    %70 = vector.shape_cast %69 : vector<8x8xf32> to vector<8x8x1xf32>
    %71 = tpu.reciprocal %70 : vector<8x8x1xf32> -> vector<8x8x1xf32>
    %72 = vector.broadcast %71 : vector<8x8x1xf32> to vector<8x8x8xf32>
    %73 = arith.mulf %68, %72 : vector<8x8x8xf32>
    "tpu.trace_start"() <{level = 10 : i32, message = "nqk,nkd->nqd"}> : () -> ()
    %cst_15 = arith.constant dense<0.000000e+00> : vector<8x8x8xf32>
    %74 = tpu.matmul %73, %62, %cst_15 {dimension_numbers = #tpu.dot_dimension_numbers<[2], [1], [1], [2], [0, 0, 0, 1, 1, 2], [0], [0]>} : vector<8x8x8xf32>, vector<8x8x8xf32>, vector<8x8x8xf32> -> vector<8x8x8xf32>
    "tpu.trace_stop"() : () -> ()
    %75 = vector.extract_strided_slice %74 {offsets = [0, 0, 0], sizes = [2, 8, 8], strides = [1, 1, 1]} : vector<8x8x8xf32> to vector<2x8x8xf32>
    %76 = vector.shape_cast %75 : vector<2x8x8xf32> to vector<16x8xf32>
    %77 = vector.extract_strided_slice %74 {offsets = [2, 0, 0], sizes = [2, 8, 8], strides = [1, 1, 1]} : vector<8x8x8xf32> to vector<2x8x8xf32>
    %78 = vector.shape_cast %77 : vector<2x8x8xf32> to vector<16x8xf32>
    %79 = vector.extract_strided_slice %74 {offsets = [4, 0, 0], sizes = [2, 8, 8], strides = [1, 1, 1]} : vector<8x8x8xf32> to vector<2x8x8xf32>
    %80 = vector.shape_cast %79 : vector<2x8x8xf32> to vector<16x8xf32>
    %81 = vector.extract_strided_slice %74 {offsets = [6, 0, 0], sizes = [2, 8, 8], strides = [1, 1, 1]} : vector<8x8x8xf32> to vector<2x8x8xf32>
    %82 = vector.shape_cast %81 : vector<2x8x8xf32> to vector<16x8xf32>
    %83 = tpu.concatenate %76, %78, %80, %82 in 1 : vector<16x8xf32>, vector<16x8xf32>, vector<16x8xf32>, vector<16x8xf32> -> vector<16x32xf32>
    %cst_16 = arith.constant dense<0.000000e+00> : vector<16x32xf32>
    %84 = tpu.matmul %83, %2, %cst_16 {dimension_numbers = #tpu.dot_dimension_numbers<[1], [0], [0], [1], [0, 0, 1, 1], [], []>} : vector<16x32xf32>, vector<32x32xf32>, vector<16x32xf32> -> vector<16x32xf32>
    %85 = vector.broadcast %10 : vector<1x32xf32> to vector<16x32xf32>
    %86 = arith.addf %84, %85 : vector<16x32xf32>
    %87 = arith.addf %34, %86 : vector<16x32xf32>
    %cst_17 = arith.constant dense<0.000000e+00> : vector<16xf32>
    %88 = vector.multi_reduction <add>, %87, %cst_17 [1] : vector<16x32xf32> to vector<16xf32>
    %89 = vector.shape_cast %88 : vector<16xf32> to vector<16x1xf32>
    %cst_18 = arith.constant 3.200000e+01 : f32
    %90 = vector.broadcast %cst_18 : f32 to vector<16x1xf32>
    %91 = arith.divf %89, %90 : vector<16x1xf32>
    %92 = vector.broadcast %91 : vector<16x1xf32> to vector<16x32xf32>
    %93 = arith.subf %87, %92 : vector<16x32xf32>
    %94 = arith.mulf %93, %93 : vector<16x32xf32>
    %cst_19 = arith.constant dense<0.000000e+00> : vector<16xf32>
    %95 = vector.multi_reduction <add>, %94, %cst_19 [1] : vector<16x32xf32> to vector<16xf32>
    %96 = vector.shape_cast %95 : vector<16xf32> to vector<16x1xf32>
    %cst_20 = arith.constant 3.200000e+01 : f32
    %97 = vector.broadcast %cst_20 : f32 to vector<16x1xf32>
    %98 = arith.divf %96, %97 : vector<16x1xf32>
    %99 = vector.broadcast %91 : vector<16x1xf32> to vector<16x32xf32>
    %100 = arith.subf %87, %99 : vector<16x32xf32>
    %cst_21 = arith.constant 9.99999974E-6 : f32
    %101 = vector.broadcast %cst_21 : f32 to vector<16x1xf32>
    %102 = arith.addf %98, %101 : vector<16x1xf32>
    %103 = math.rsqrt %102 : vector<16x1xf32>
    %104 = vector.broadcast %103 : vector<16x1xf32> to vector<16x32xf32>
    %105 = arith.mulf %100, %104 : vector<16x32xf32>
    %106 = vector.broadcast %8 : vector<1x32xf32> to vector<16x32xf32>
    %107 = arith.mulf %105, %106 : vector<16x32xf32>
    %108 = vector.broadcast %9 : vector<1x32xf32> to vector<16x32xf32>
    %109 = arith.addf %107, %108 : vector<16x32xf32>
    %cst_22 = arith.constant dense<0.000000e+00> : vector<16x128xf32>
    %110 = tpu.matmul %109, %3, %cst_22 {dimension_numbers = #tpu.dot_dimension_numbers<[1], [0], [0], [1], [0, 0, 1, 1], [], []>} : vector<16x32xf32>, vector<32x128xf32>, vector<16x128xf32> -> vector<16x128xf32>
    %111 = vector.broadcast %12 : vector<1x128xf32> to vector<16x128xf32>
    %112 = arith.addf %110, %111 : vector<16x128xf32>
    %cst_23 = arith.constant 0.000000e+00 : f32
    %113 = vector.broadcast %cst_23 : f32 to vector<16x128xf32>
    %114 = arith.maximumf %112, %113 : vector<16x128xf32>
    %cst_24 = arith.constant dense<0.000000e+00> : vector<16x32xf32>
    %115 = tpu.matmul %114, %4, %cst_24 {dimension_numbers = #tpu.dot_dimension_numbers<[1], [0], [0], [1], [0, 0, 1, 1], [], []>} : vector<16x128xf32>, vector<128x32xf32>, vector<16x32xf32> -> vector<16x32xf32>
    %116 = vector.broadcast %11 : vector<1x32xf32> to vector<16x32xf32>
    %117 = arith.addf %115, %116 : vector<16x32xf32>
    %118 = arith.addf %109, %117 : vector<16x32xf32>
    %c0_25 = arith.constant 0 : index
    %c0_26 = arith.constant 0 : index
    %119 = vector.load %arg2[%c0_25, %c0_26] : memref<16x32xf32, #tpu.memory_space<vmem>>, vector<16x32xf32>
    tpu.vector_store %arg2[%c0_25, %c0_26], %118 {strides = array<i32>} : memref<16x32xf32, #tpu.memory_space<vmem>>, vector<16x32xf32>,
    return
  }
}

</mosaic_0001>

<bundles_post_ra>
// kernel: tpu_custom_call.1
= control target key start
LH: loop header
LB: loop body
LE: loop exit
PB: predicated region body
PF: predicated region fallthrough
CT: control target
= control target key end

     0   :  { %7 = vsyncpa [#allocation3], 0  ;;  %s2572_s0 = inlined_call_operand.hbm [shape: f32[16,32], index: 0, kind: input, shape index: {}]   ;;  %s2573_s1 = inlined_call_operand.hbm [shape: f32[232,128], index: 1, kind: input, shape index: {}]   ;;  %s2574_s2 = inlined_call_operand.hbm [shape: f32[16,32], index: 2, kind: output, shape index: {}]  }
   0x1   :  { %8 = vsyncpa [#allocation6], 0 }
   0x2   :  { %9 = vsyncpa [#allocation4], 0  ;;  %s2284_s9 = smov [#allocation2]   ;;  %s2212_s13 = scalar_lea.hbm %s2572_s0, 256 }
   0x3   :  { %s15_s10 = sshll.u32 %s2284_s9, 4  ;;  %p2213_p0 = scmp.ne.s32.totalorder %s2572_s0, %s2212_s13  ;;  %s16_s10 = int_to_ptr.vmem [resolvable:$true] %s15_s10 }
   0x4   :  { %p2216_p1 = scmp.lt.u32.totalorder %s2212_s13, %s2572_s0 }
   0x6   :  { %p2218_p2 = pnand %p2216_p1, %p2213_p0 }
   0x8   :  { %2221 = shalt.err (!%p2218_p2)
}
   0x9   :  { %s2222_s18 = scalar_lea.vmem %s16_s10, 256  ;;  %p2227_p4 = scmp.lt.s32.totalorder %s16_s10, %s16_s10 }
   0xa   :  { %p2223_p3 = scmp.ne.s32.totalorder %s16_s10, %s2222_s18  ;;  %p2228_p5 = scmp.lt.s32.totalorder %s2222_s18, %s2222_s18 }
   0xc   :  { %p2229_p6 = por %p2228_p5, %p2227_p4 }
   0xe   :  { %p2230_p7 = pnand %p2229_p6, %p2223_p3 }
  0x10   :  { %2233 = shalt.err (!%p2230_p7)
}
  0x11   :  { %s2285_s19 = smov 128   ;;  %s2286_s20 = smov 8  }
  0x12   :  { %21 = dma.hbm_to_vmem [thread:$0]  %s2572_s0, 256, %s16_s10, [#allocation3], %s2285_s19, %s2285_s19, %s2286_s20  }
  0x13   :  { %s2287_s23 = smov [#allocation5]   ;;  %s2234_s27 = scalar_lea.hbm %s2573_s1, 3712 }
  0x14   :  { %s27_s24 = sshll.u32 %s2287_s23, 4  ;;  %p2235_p8 = scmp.ne.s32.totalorder %s2573_s1, %s2234_s27  ;;  %s28_s24 = int_to_ptr.vmem [resolvable:$true] %s27_s24 }
  0x15   :  { %p2238_p9 = scmp.lt.u32.totalorder %s2234_s27, %s2573_s1 }
  0x17   :  { %p2240_p10 = pnand %p2238_p9, %p2235_p8 }
  0x19   :  { %2243 = shalt.err (!%p2240_p10)
}
  0x1a   :  { %s2244_s4 = scalar_lea.vmem %s28_s24, 3712  ;;  %p2249_p12 = scmp.lt.s32.totalorder %s28_s24, %s28_s24 }
  0x1b   :  { %p2245_p11 = scmp.ne.s32.totalorder %s28_s24, %s2244_s4  ;;  %p2250_p13 = scmp.lt.s32.totalorder %s2244_s4, %s2244_s4 }
  0x1d   :  { %p2251_p0 = por %p2250_p13, %p2249_p12 }
  0x1f   :  { %p2252_p1 = pnand %p2251_p0, %p2245_p11 }
  0x21   :  { %2255 = shalt.err (!%p2252_p1)
}
  0x22   :  { %33 = dma.hbm_to_vmem [thread:$0]  %s2573_s1, 3712, %s28_s24, [#allocation6], %s2285_s19, %s2285_s19, %s2286_s20  }
  0x23   :  { %2278 = dma.done.wait [#allocation3], 256  }
  0x24   :  { %2279 = vsyncadd [#allocation3], 4294967040 }
  0x25   :  { %2280 = dma.done.wait [#allocation6], 3712  }
  0x26   :  { %2281 = vsyncadd [#allocation6], 4294963584  ;;  %vm71_vm0 = vcmask 261120   ;;  %v40_v0 = vld [vmem:[#allocation2] sm:$0xff]  ;;  %v41_v1 = vld [vmem:[#allocation2 + $0x8] sm:$0xff]  ;;  %v99_v22 = vlaneseq  ;;  %v2288_v41 = vmov 0.0  }
  0x27   :  { %v72_v2 = vsel %vm71_vm0, %v40_v0, 0.0  ;;  %v75_v3 = vsel %vm71_vm0, %v41_v1, 0.0  ;;  %v42_v14 = vld [vmem:[#allocation5] sm:$0xff]  ;;  %v43_v15 = vld [vmem:[#allocation5 + $0x8] sm:$0xff]  ;;  %v44_v16 = vld [vmem:[#allocation5 + $0x10] sm:$0xff]  ;;  %1975 = vmatprep.subr.mxu0 %v2288_v41  ;;  %vm2289_vm1 = vmmov 0  }
  0x28   :  { %73 = vadd.xlane.f32.xlu0 %v72_v2  ;;  %v2102_v17 = vpack.c.bf16 %v43_v15, %v42_v14  ;;  %v45_v18 = vld [vmem:[#allocation5 + $0x18] sm:$0xff]  ;;  %v2347_v26 = vshrl.u32 %v99_v22, 7  ;;  %v2350_v29 = vld [vmem:[#allocation5 + $0xe0] sm:$0xff]  ;;  %1977 = vmatprep.mubr.msk.f32.mxu0 %vm2289_vm1, %v2288_v41  ;;  %s2290_s1 = smov 120   ;;  %s2291_s6 = smov 112   ;;  %vm208_vm2 = vcmask 64512  }
  0x29   :  { %v2106_v19 = vpack.c.bf16 %v45_v18, %v44_v16  ;;  %s2292_s7 = smov 104   ;;  %s2293_s8 = smov 96   ;;  %vm1537_vm3 = vcmask 130048   ;;  %vm1540_vm4 = vcmask 195584  }
  0x2a   :  { %2103 = vmatprep.subr.bf16.mxu1 %v2102_v17  ;;  %v101_v28 = vsub.s32 0, %v2347_v26  ;;  %v107_v30 = vsub.s32 1, %v2347_v26  ;;  %s2294_s9 = smov 64   ;;  %s2295_s10 = smov 16  }
  0x2b   :  { %2105 = vmatpush3.bf16.msra.mxu1 %v2102_v17  ;;  %s2296_s11 = smov 24   ;;  %s2297_s12 = smov [#allocation7]  }
  0x2c   :  { %76 = vadd.xlane.f32.xlu0 %v75_v3  ;;  %2107 = vmatprep.subr.bf16.mxu1 %v2106_v19  ;;  %v102_v31 = vrot.slane %v2350_v29, %v101_v28  ;;  %v108_v34 = vrot.slane %v2350_v29, %v107_v30  ;;  %s1843_s13 = sshll.u32 %s2297_s12, 4  ;;  %s1844_s13 = int_to_ptr.vmem [resolvable:$true] %s1843_s13 }
  0x2d   :  { %s2256_s14 = scalar_lea.vmem %s1844_s13, 256  ;;  %p2261_p3 = scmp.lt.s32.totalorder %s1844_s13, %s1844_s13 }
  0x2e   :  { %p2257_p2 = scmp.ne.s32.totalorder %s1844_s13, %s2256_s14  ;;  %p2262_p4 = scmp.lt.s32.totalorder %s2256_s14, %s2256_s14 }
  0x2f   :  { %2109 = vmatpush3.bf16.msra.mxu1 %v2106_v19 }
  0x30   :  { %1965 = vmatprep.subr.mxu1 %v2288_v41  ;;  %p2263_p5 = por %p2262_p4, %p2261_p3 }
  0x32   :  { %p2264_p6 = pnand %p2263_p5, %p2257_p2 }
  0xb5   :  { %v74_v4 = vpop.xlane.xlu0 %73 }
  0xb6   :  { %v79_v5 = vmul.f32 0.03125, %v74_v4 }
  0xb8   :  { %v81_v6 = vsub.f32 %v40_v0, %v79_v5 }
  0xb9   :  { %v77_v7 = vpop.xlane.xlu0 %76 }
  0xba   :  { %v80_v8 = vmul.f32 0.03125, %v77_v7  ;;  %v83_v9 = vmul.f32 %v81_v6, %v81_v6 }
  0xbc   :  { %v82_v10 = vsub.f32 %v41_v1, %v80_v8  ;;  %v85_v11 = vsel %vm71_vm0, %v83_v9, 0.0 }
  0xbd   :  { %86 = vadd.xlane.f32.xlu1 %v85_v11 }
  0xbe   :  { %v84_v12 = vmul.f32 %v82_v10, %v82_v10 }
  0xc0   :  { %v88_v13 = vsel %vm71_vm0, %v84_v12, 0.0 }
  0xc1   :  { %89 = vadd.xlane.f32.xlu1 %v88_v13 }
 0x14a   :  { %v87_v20 = vpop.xlane.xlu1 %86 }
 0x14b   :  { %v91_v21 = vmul.f32 0.03125, %v87_v20 }
 0x14d   :  { %v93_v23 = vadd.f32 1e-05, %v91_v21 }
 0x14e   :  { %v90_v24 = vpop.xlane.xlu1 %89 }
 0x14f   :  { %2172 = vrsqrt.f32 %v93_v23  ;;  %v92_v25 = vmul.f32 0.03125, %v90_v24 }
 0x151   :  { %v94_v27 = vadd.f32 1e-05, %v92_v25 }
 0x153   :  { %2174 = vrsqrt.f32 %v94_v27 }
 0x159   :  { %v2173_v32 = vpop.eup %2172 }
 0x15a   :  { %v97_v33 = vmul.f32 %v2173_v32, %v81_v6 }
 0x15c   :  { %v103_v35 = vmul.f32 %v102_v31, %v97_v33 }
 0x15d   :  { %v2175_v36 = vpop.eup %2174 }
 0x15e   :  { %v98_v37 = vmul.f32 %v2175_v36, %v82_v10  ;;  %v2355_v38 = vadd.f32 %v108_v34, %v103_v35 }
 0x160   :  { %v104_v39 = vmul.f32 %v102_v31, %v98_v37  ;;  %1962 = vmatprep.mubr.msk.f32.mxu1 %vm71_vm0, %v2355_v38 }
 0x162   :  { %v2359_v40 = vadd.f32 %v108_v34, %v104_v39 }
 0x164   :  { %1963 = vmatmul.mubr.msk.f32.vlgmr.msra.gmra.mrb[0].mxu1 %vm71_vm0, %v2359_v40 }
 0x165   :  { %1967 = vmatprep.mubr.msk.f32.mxu1 %vm2289_vm1, %v2288_v41 }
 0x237   :  { %v2369_v42 = vpop.f32.mrb[0].mxu1 }
 0x238   :  { %196 = vrot.lane.b32.xlu1 %v2369_v42, %s2290_s1  ;;  %v2372_v43 = vpop.f32.mrb[1].mxu1 }
 0x239   :  { %194 = vrot.lane.b32.xlu0 %v2372_v43, %s2290_s1 }
 0x23c   :  { %198 = vrot.lane.b32.xlu1 %v2372_v43, %s2291_s6 }
 0x23d   :  { %202 = vrot.lane.b32.xlu0 %v2372_v43, %s2292_s7 }
 0x240   :  { %200 = vrot.lane.b32.xlu1 %v2369_v42, %s2291_s6 }
 0x241   :  { %206 = vrot.lane.b32.xlu0 %v2372_v43, %s2293_s8 }
 0x244   :  { %204 = vrot.lane.b32.xlu1 %v2369_v42, %s2292_s7 }
 0x248   :  { %283 = vrot.lane.b32.xlu1 %v2369_v42, %s2293_s8 }
 0x2aa   :  { %v2381_v44 = vpop.permute.xlu1 %196 }
 0x2ab   :  { %435 = vrot.lane.b32.xlu1 %v2381_v44, %s2293_s8  ;;  %v2384_v45 = vpop.permute.xlu0 %194 }
 0x2ac   :  { %359 = vrot.lane.b32.xlu0 %v2384_v45, %s2293_s8 }
 0x2ae   :  { %v2387_v46 = vpop.permute.xlu1 %198 }
 0x2af   :  { %v2389_v47 = vpop.permute.xlu0 %202 }
 0x2b0   :  { %511 = vrot.lane.b32.xlu0 %v2387_v46, %s2293_s8 }
 0x2b2   :  { %v2392_v48 = vpop.permute.xlu1 %200 }
 0x2b3   :  { %587 = vrot.lane.b32.xlu1 %v2392_v48, %s2293_s8  ;;  %v207_v49 = vpop.permute.xlu0 %206 }
 0x2b4   :  { %663 = vrot.lane.b32.xlu0 %v2389_v47, %s2293_s8  ;;  %1966 = vmatpush3.xpose.msk.msra.mxu1 %vm208_vm2, %v207_v49 }
 0x2b5   :  { %1970 = vmatprep.subr.mxu1 %v2288_v41 }
 0x2b6   :  { %v2398_v50 = vpop.permute.xlu1 %204 }
 0x2b7   :  { %739 = vrot.lane.b32.xlu1 %v2398_v50, %s2293_s8  ;;  %1968 = vmatmul.mubr.msk.f32.vlgmr.msra.gmra.mrb[2].mxu1 %vm208_vm2, %v2372_v43 }
 0x2b8   :  { %1972 = vmatprep.mubr.msk.f32.mxu1 %vm2289_vm1, %v2288_v41 }
 0x2ba   :  { %v284_v51 = vpop.permute.xlu1 %283 }
 0x2bb   :  { %1971 = vmatpush3.xpose.msk.msra.mxu1 %vm208_vm2, %v284_v51 }
 0x2bc   :  { %1980 = vmatprep.subr.mxu1 %v2288_v41 }
 0x2be   :  { %1973 = vmatmul.mubr.msk.f32.vlgmr.msra.gmra.mrb[4].mxu1 %vm208_vm2, %v2369_v42 }
 0x2bf   :  { %1982 = vmatprep.mubr.msk.f32.mxu1 %vm2289_vm1, %v2288_v41 }
 0x31d   :  { %v436_v52 = vpop.permute.xlu1 %435 }
 0x31e   :  { %1981 = vmatpush3.xpose.msk.msra.mxu1 %vm208_vm2, %v436_v52  ;;  %v360_v53 = vpop.permute.xlu0 %359 }
 0x31f   :  { %1976 = vmatpush3.xpose.msk.msra.mxu0 %vm208_vm2, %v360_v53  ;;  %1990 = vmatprep.subr.mxu1 %v2288_v41 }
 0x320   :  { %1985 = vmatprep.subr.mxu0 %v2288_v41 }
 0x321   :  { %1983 = vmatmul.mubr.msk.f32.vlgmr.msra.gmra.mrb[6].mxu1 %vm208_vm2, %v2381_v44 }
 0x322   :  { %1978 = vmatmul.mubr.msk.f32.vlgmr.msra.gmra.mrb[0].mxu0 %vm208_vm2, %v2384_v45  ;;  %v512_v54 = vpop.permute.xlu0 %511  ;;  %1992 = vmatprep.mubr.msk.f32.mxu1 %vm2289_vm1, %v2288_v41 }
 0x323   :  { %1986 = vmatpush3.xpose.msk.msra.mxu0 %vm208_vm2, %v512_v54  ;;  %1987 = vmatprep.mubr.msk.f32.mxu0 %vm2289_vm1, %v2288_v41 }
 0x324   :  { %1995 = vmatprep.subr.mxu0 %v2288_v41 }
 0x325   :  { %v588_v55 = vpop.permute.xlu1 %587 }
 0x326   :  { %1988 = vmatmul.mubr.msk.f32.vlgmr.msra.gmra.mrb[2].mxu0 %vm208_vm2, %v2387_v46  ;;  %1991 = vmatpush3.xpose.msk.msra.mxu1 %vm208_vm2, %v588_v55  ;;  %v664_v56 = vpop.permute.xlu0 %663 }
 0x327   :  { %1996 = vmatpush3.xpose.msk.msra.mxu0 %vm208_vm2, %v664_v56  ;;  %1997 = vmatprep.mubr.msk.f32.mxu0 %vm2289_vm1, %v2288_v41 }
 0x328   :  { %2000 = vmatprep.subr.mxu1 %v2288_v41  ;;  %2005 = vmatprep.subr.mxu0 %v2288_v41 }
 0x329   :  { %v740_v57 = vpop.permute.xlu1 %739  ;;  %1993 = vmatmul.mubr.msk.f32.vlgmr.msra.gmra.mrb[8].mxu1 %vm208_vm2, %v2392_v48 }
 0x32a   :  { %1998 = vmatmul.mubr.msk.f32.vlgmr.msra.gmra.mrb[4].mxu0 %vm208_vm2, %v2389_v47  ;;  %2001 = vmatpush3.xpose.msk.msra.mxu1 %vm208_vm2, %v740_v57 }
 0x32b   :  { %2002 = vmatprep.mubr.msk.f32.mxu1 %vm2289_vm1, %v2288_v41  ;;  %2010 = vmatprep.subr.mxu1 %v2288_v41 }
 0x32c   :  { %2007 = vmatprep.mubr.msk.f32.mxu0 %vm2289_vm1, %v2288_v41 }
 0x32d   :  { %2003 = vmatmul.mubr.msk.f32.vlgmr.msra.gmra.mrb[10].mxu1 %vm208_vm2, %v2398_v50 }
 0x32e   :  { %2012 = vmatprep.mubr.msk.f32.mxu1 %vm2289_vm1, %v2288_v41 }
 0x38a   :  { %v279_v58 = vpop.f32.mrb[2].mxu1 }
 0x38b   :  { %v1969_v59 = vpop.f32.mrb[3].mxu1  ;;  %v815_v60 = vsel %vm208_vm2, %v279_v58, -inf }
 0x38c   :  { %816 = vmax.xlane.f32.xlu0 %v815_v60 }
 0x391   :  { %v355_v61 = vpop.f32.mrb[4].mxu1 }
 0x392   :  { %v1974_v62 = vpop.f32.mrb[5].mxu1  ;;  %v818_v63 = vsel %vm208_vm2, %v355_v61, -inf }
 0x393   :  { %819 = vmax.xlane.f32.xlu1 %v818_v63 }
 0x3f4   :  { %v507_v0 = vpop.f32.mrb[6].mxu1 }
 0x3f5   :  { %v431_v1 = vpop.f32.mrb[0].mxu0  ;;  %v1984_v2 = vpop.f32.mrb[7].mxu1  ;;  %v824_v3 = vsel %vm208_vm2, %v507_v0, -inf }
 0x3f6   :  { %825 = vmax.xlane.f32.xlu0 %v824_v3  ;;  %v1979_v4 = vpop.f32.mrb[1].mxu0  ;;  %v821_v6 = vsel %vm208_vm2, %v431_v1, -inf }
 0x3f9   :  { %v583_v5 = vpop.f32.mrb[2].mxu0 }
 0x3fa   :  { %822 = vmax.xlane.f32.xlu0 %v821_v6  ;;  %v1989_v7 = vpop.f32.mrb[3].mxu0  ;;  %v827_v12 = vsel %vm208_vm2, %v583_v5, -inf }
 0x3fc   :  { %v659_v8 = vpop.f32.mrb[8].mxu1 }
 0x3fd   :  { %v1994_v9 = vpop.f32.mrb[9].mxu1  ;;  %v735_v10 = vpop.f32.mrb[4].mxu0  ;;  %v830_v11 = vsel %vm208_vm2, %v659_v8, -inf }
 0x3fe   :  { %831 = vmax.xlane.f32.xlu1 %v830_v11  ;;  %828 = vmax.xlane.f32.xlu0 %v827_v12  ;;  %v1999_v13 = vpop.f32.mrb[5].mxu0  ;;  %v833_v17 = vsel %vm208_vm2, %v735_v10, -inf }
 0x400   :  { %v811_v14 = vpop.f32.mrb[10].mxu1 }
 0x401   :  { %v2004_v15 = vpop.f32.mrb[11].mxu1  ;;  %v836_v16 = vsel %vm208_vm2, %v811_v14, -inf }
 0x402   :  { %837 = vmax.xlane.f32.xlu1 %v836_v16  ;;  %834 = vmax.xlane.f32.xlu0 %v833_v17 }
 0x413   :  { %979 = vrot.lane.b32.xlu1 %v2369_v42, %s2294_s9 }
 0x417   :  { %1055 = vrot.lane.b32.xlu1 %v2384_v45, %s2294_s9 }
 0x418   :  { %903 = vrot.lane.b32.xlu0 %v2372_v43, %s2294_s9 }
 0x419   :  { %v817_v18 = vpop.xlane.xlu0 %816 }
 0x41a   :  { %v839_v19 = vsub.f32 %v279_v58, %v817_v18 }
 0x41b   :  { %1131 = vrot.lane.b32.xlu1 %v2381_v44, %s2294_s9 }
 0x41c   :  { %1207 = vrot.lane.b32.xlu0 %v2387_v46, %s2294_s9  ;;  %v847_v20 = vmul.f32 1.442695, %v839_v19 }
 0x41e   :  { %2176 = vpow2.f32 %v847_v20 }
 0x41f   :  { %1283 = vrot.lane.b32.xlu1 %v2392_v48, %s2294_s9 }
 0x420   :  { %v820_v21 = vpop.xlane.xlu1 %819 }
 0x421   :  { %v840_v22 = vsub.f32 %v355_v61, %v820_v21 }
 0x423   :  { %v849_v23 = vmul.f32 1.442695, %v840_v22 }
 0x425   :  { %2178 = vpow2.f32 %v849_v23 }
 0x428   :  { %v2467_v24 = vpop.eup %2176 }
 0x429   :  { %v863_v25 = vsel %vm208_vm2, %v2467_v24, 0.0 }
 0x42f   :  { %v2471_v27 = vpop.eup %2178 }
 0x430   :  { %v866_v28 = vsel %vm208_vm2, %v2471_v27, 0.0 }
 0x43b   :  { %864 = vadd.xlane.f32.xlu0 %v863_v25 }
 0x443   :  { %867 = vadd.xlane.f32.xlu1 %v866_v28 }
 0x483   :  { %v826_v30 = vpop.xlane.xlu0 %825 }
 0x484   :  { %v842_v31 = vsub.f32 %v507_v0, %v826_v30 }
 0x486   :  { %v853_v32 = vmul.f32 1.442695, %v842_v31 }
 0x487   :  { %v823_v33 = vpop.xlane.xlu0 %822 }
 0x488   :  { %2180 = vpow2.f32 %v853_v32  ;;  %v841_v34 = vsub.f32 %v431_v1, %v823_v33 }
 0x48a   :  { %v851_v35 = vmul.f32 1.442695, %v841_v34 }
 0x48b   :  { %v832_v36 = vpop.xlane.xlu1 %831  ;;  %v829_v37 = vpop.xlane.xlu0 %828 }
 0x48c   :  { %2182 = vpow2.f32 %v851_v35  ;;  %v844_v39 = vsub.f32 %v659_v8, %v832_v36  ;;  %v843_v42 = vsub.f32 %v583_v5, %v829_v37  ;;  %v46_v37 = vld [vmem:[#allocation5 + $0x20] sm:$0xff] }
 0x48e   :  { %v857_v43 = vmul.f32 1.442695, %v844_v39  ;;  %v855_v44 = vmul.f32 1.442695, %v843_v42  ;;  %v47_v39 = vld [vmem:[#allocation5 + $0x28] sm:$0xff] }
 0x48f   :  { %v838_v45 = vpop.xlane.xlu1 %837  ;;  %v835_v46 = vpop.xlane.xlu0 %834  ;;  %v2110_v42 = vpack.c.bf16 %v47_v39, %v46_v37  ;;  %v58_v37 = vld [vmem:[#allocation5 + $0x80] sm:$0xff]  ;;  %v59_v39 = vld [vmem:[#allocation5 + $0x88] sm:$0xff] }
 0x490   :  { %2184 = vpow2.f32 %v857_v43  ;;  %v846_v48 = vsub.f32 %v811_v14, %v838_v45  ;;  %v845_v49 = vsub.f32 %v735_v10, %v835_v46  ;;  %v48_v43 = vld [vmem:[#allocation5 + $0x30] sm:$0xff] }
 0x491   :  { %2186 = vpow2.f32 %v855_v44  ;;  %v49_v44 = vld [vmem:[#allocation5 + $0x38] sm:$0xff] }
 0x492   :  { %v2181_v51 = vpop.eup %2180  ;;  %v861_v52 = vmul.f32 1.442695, %v846_v48  ;;  %v859_v53 = vmul.f32 1.442695, %v845_v49  ;;  %v2114_v45 = vpack.c.bf16 %v49_v44, %v48_v43  ;;  %v60_v43 = vld [vmem:[#allocation5 + $0x90] sm:$0xff]  ;;  %v61_v44 = vld [vmem:[#allocation5 + $0x98] sm:$0xff] }
 0x493   :  { %v980_v54 = vpop.permute.xlu1 %979  ;;  %v904_v55 = vpop.permute.xlu0 %903  ;;  %v872_v56 = vsel %vm208_vm2, %v2181_v51, 0.0 }
 0x494   :  { %2188 = vpow2.f32 %v861_v52  ;;  %2011 = vmatpush3.msra.mxu1 %v980_v54  ;;  %873 = vadd.xlane.f32.xlu1 %v872_v56 }
 0x495   :  { %2190 = vpow2.f32 %v859_v53  ;;  %2006 = vmatpush3.msra.mxu0 %v904_v55  ;;  %2020 = vmatprep.subr.mxu1 %v2288_v41 }
 0x496   :  { %v2183_v57 = vpop.eup %2182  ;;  %2015 = vmatprep.subr.mxu0 %v2288_v41 }
 0x497   :  { %v869_v58 = vsel %vm208_vm2, %v2183_v57, 0.0  ;;  %v1056_v3 = vpop.permute.xlu1 %1055  ;;  %v1208_v4 = vpop.permute.xlu0 %1207 }
 0x498   :  { %870 = vadd.xlane.f32.xlu0 %v869_v58 }
 0x49a   :  { %v2185_v59 = vpop.eup %2184 }
 0x49b   :  { %v2187_v60 = vpop.eup %2186  ;;  %v878_v61 = vsel %vm208_vm2, %v2185_v59, 0.0  ;;  %v1132_v5 = vpop.permute.xlu1 %1131 }
 0x49c   :  { %879 = vadd.xlane.f32.xlu1 %v878_v61  ;;  %v875_v62 = vsel %vm208_vm2, %v2187_v60, 0.0 }
 0x49d   :  { %876 = vadd.xlane.f32.xlu0 %v875_v62 }
 0x49e   :  { %v2481_v63 = vpop.eup %2188 }
 0x49f   :  { %v2483_v0 = vpop.eup %2190  ;;  %v884_v1 = vsel %vm208_vm2, %v2481_v63, 0.0  ;;  %v1284_v7 = vpop.permute.xlu1 %1283 }
 0x4a0   :  { %885 = vadd.xlane.f32.xlu1 %v884_v1  ;;  %v881_v2 = vsel %vm208_vm2, %v2483_v0, 0.0 }
 0x4a1   :  { %882 = vadd.xlane.f32.xlu0 %v881_v2 }
 0x4b1   :  { %1435 = vrot.lane.b32.xlu1 %v2398_v50, %s2294_s9 }
 0x4b7   :  { %1359 = vrot.lane.b32.xlu0 %v2389_v47, %s2294_s9 }
 0x4c8   :  { %v865_v6 = vpop.xlane.xlu0 %864 }
 0x4c9   :  { %2192 = vrcp.f32 %v865_v6 }
 0x4d0   :  { %v868_v8 = vpop.xlane.xlu1 %867 }
 0x4d1   :  { %2194 = vrcp.f32 %v868_v8 }
 0x4d3   :  { %v2193_v9 = vpop.eup %2192 }
 0x4d4   :  { %v895_v10 = vmul.f32 %v2193_v9, %v2467_v24 }
 0x4d6   :  { %2008 = vmatmul.mubr.msk.f32.vlgmr.msra.gmra.mrb[6].mxu0 %vm208_vm2, %v895_v10 }
 0x4d7   :  { %2016 = vmatpush3.msra.mxu0 %v1056_v3  ;;  %2017 = vmatprep.mubr.msk.f32.mxu0 %vm2289_vm1, %v2288_v41 }
 0x4d8   :  { %2025 = vmatprep.subr.mxu0 %v2288_v41 }
 0x4db   :  { %v2195_v47 = vpop.eup %2194 }
 0x4dc   :  { %v896_v50 = vmul.f32 %v2195_v47, %v2471_v27 }
 0x4de   :  { %2013 = vmatmul.mubr.msk.f32.vlgmr.msra.gmra.mrb[12].mxu1 %vm208_vm2, %v896_v50 }
 0x4df   :  { %2021 = vmatpush3.msra.mxu1 %v1132_v5  ;;  %2022 = vmatprep.mubr.msk.f32.mxu1 %vm2289_vm1, %v2288_v41 }
 0x4e0   :  { %2030 = vmatprep.subr.mxu1 %v2288_v41 }
 0x521   :  { %v874_v11 = vpop.xlane.xlu1 %873 }
 0x522   :  { %2196 = vrcp.f32 %v874_v11 }
 0x525   :  { %v871_v12 = vpop.xlane.xlu0 %870 }
 0x526   :  { %2198 = vrcp.f32 %v871_v12 }
 0x529   :  { %v880_v13 = vpop.xlane.xlu1 %879 }
 0x52a   :  { %2200 = vrcp.f32 %v880_v13  ;;  %v877_v14 = vpop.xlane.xlu0 %876 }
 0x52b   :  { %2202 = vrcp.f32 %v877_v14 }
 0x52c   :  { %v2197_v15 = vpop.eup %2196 }
 0x52d   :  { %v898_v16 = vmul.f32 %v2197_v15, %v2181_v51  ;;  %v886_v17 = vpop.xlane.xlu1 %885 }
 0x52e   :  { %2204 = vrcp.f32 %v886_v17  ;;  %v883_v18 = vpop.xlane.xlu0 %882 }
 0x52f   :  { %2206 = vrcp.f32 %v883_v18  ;;  %2023 = vmatmul.mubr.msk.f32.vlgmr.msra.gmra.mrb[14].mxu1 %vm208_vm2, %v898_v16 }
 0x530   :  { %v2199_v19 = vpop.eup %2198  ;;  %2031 = vmatpush3.msra.mxu1 %v1284_v7  ;;  %2032 = vmatprep.mubr.msk.f32.mxu1 %vm2289_vm1, %v2288_v41  ;;  %v1545_v7 = vsub.s32 4, %v2347_v26 }
 0x531   :  { %v897_v20 = vmul.f32 %v2199_v19, %v2183_v57  ;;  %2040 = vmatprep.subr.mxu1 %v2288_v41  ;;  %v1436_v25 = vpop.permute.xlu1 %1435 }
 0x532   :  { %v1360_v28 = vpop.permute.xlu0 %1359  ;;  %v1546_v8 = vrot.slane %v2350_v29, %v1545_v7 }
 0x533   :  { %2018 = vmatmul.mubr.msk.f32.vlgmr.msra.gmra.mrb[8].mxu0 %vm208_vm2, %v897_v20 }
 0x534   :  { %v2201_v21 = vpop.eup %2200  ;;  %2026 = vmatpush3.msra.mxu0 %v1208_v4  ;;  %2027 = vmatprep.mubr.msk.f32.mxu0 %vm2289_vm1, %v2288_v41 }
 0x535   :  { %v2203_v22 = vpop.eup %2202  ;;  %v900_v23 = vmul.f32 %v2201_v21, %v2185_v59  ;;  %2035 = vmatprep.subr.mxu0 %v2288_v41 }
 0x536   :  { %v899_v24 = vmul.f32 %v2203_v22, %v2187_v60 }
 0x537   :  { %2033 = vmatmul.mubr.msk.f32.vlgmr.msra.gmra.mrb[16].mxu1 %vm208_vm2, %v900_v23  ;;  %v50_v23 = vld [vmem:[#allocation5 + $0x40] sm:$0xff] }
 0x538   :  { %v2205_v27 = vpop.eup %2204  ;;  %2028 = vmatmul.mubr.msk.f32.vlgmr.msra.gmra.mrb[10].mxu0 %vm208_vm2, %v899_v24  ;;  %2041 = vmatpush3.msra.mxu1 %v1436_v25  ;;  %v51_v24 = vld [vmem:[#allocation5 + $0x48] sm:$0xff] }
 0x539   :  { %v2207_v30 = vpop.eup %2206  ;;  %v902_v31 = vmul.f32 %v2205_v27, %v2481_v63  ;;  %2036 = vmatpush3.msra.mxu0 %v1360_v28  ;;  %2037 = vmatprep.mubr.msk.f32.mxu0 %vm2289_vm1, %v2288_v41  ;;  %v2118_v25 = vpack.c.bf16 %v51_v24, %v50_v23  ;;  %v52_v27 = vld [vmem:[#allocation5 + $0x50] sm:$0xff]  ;;  %v53_v28 = vld [vmem:[#allocation5 + $0x58] sm:$0xff] }
 0x53a   :  { %v901_v32 = vmul.f32 %v2207_v30, %v2483_v0  ;;  %2042 = vmatprep.mubr.msk.f32.mxu1 %vm2289_vm1, %v2288_v41  ;;  %2111 = vmatprep.subr.bf16.mxu1 %v2110_v42  ;;  %v2122_v30 = vpack.c.bf16 %v53_v28, %v52_v27 }
 0x53b   :  { %2043 = vmatmul.mubr.msk.f32.vlgmr.msra.gmra.mrb[18].mxu1 %vm208_vm2, %v902_v31  ;;  %v54_v31 = vld [vmem:[#allocation5 + $0x60] sm:$0xff] }
 0x53c   :  { %2038 = vmatmul.mubr.msk.f32.vlgmr.msra.gmra.mrb[12].mxu0 %vm208_vm2, %v901_v32  ;;  %2113 = vmatpush3.bf16.msra.mxu1 %v2110_v42  ;;  %v55_v32 = vld [vmem:[#allocation5 + $0x68] sm:$0xff]  ;;  %v2134_v42 = vpack.c.bf16 %v59_v39, %v58_v37 }
 0x53d   :  { %2115 = vmatprep.subr.bf16.mxu1 %v2114_v45 }
 0x540   :  { %2117 = vmatpush3.bf16.msra.mxu1 %v2114_v45  ;;  %v2138_v45 = vpack.c.bf16 %v61_v44, %v60_v43 }
 0x541   :  { %2119 = vmatprep.subr.bf16.mxu1 %v2118_v25 }
 0x5a9   :  { %v975_v33 = vpop.f32.mrb[6].mxu0 }
 0x5aa   :  { %v2009_v34 = vpop.f32.mrb[7].mxu0 }
 0x5ab   :  { %v2126_v34 = vpack.c.bf16 %v55_v32, %v54_v31 }
 0x5ad   :  { %2127 = vmatprep.subr.bf16.mxu0 %v2126_v34 }
 0x5ae   :  { %2129 = vmatpush3.bf16.msra.mxu0 %v2126_v34 }
 0x5b1   :  { %v1051_v35 = vpop.f32.mrb[12].mxu1 }
 0x5b2   :  { %v2014_v36 = vpop.f32.mrb[13].mxu1 }
 0x602   :  { %v1203_v46 = vpop.f32.mrb[14].mxu1 }
 0x603   :  { %1515 = vrot.lane.b32.xlu1 %v1203_v46, %s2286_s20  ;;  %v2024_v41 = vpop.f32.mrb[15].mxu1  ;;  %v62_v46 = vld [vmem:[#allocation5 + $0xa0] sm:$0xff] }
 0x604   :  { %v63_v41 = vld [vmem:[#allocation5 + $0xa8] sm:$0xff] }
 0x606   :  { %v1127_v48 = vpop.f32.mrb[8].mxu0 }
 0x607   :  { %1513 = vrot.lane.b32.xlu0 %v1127_v48, %s2286_s20  ;;  %v2019_v49 = vpop.f32.mrb[9].mxu0  ;;  %v2142_v48 = vpack.c.bf16 %v63_v41, %v62_v46 }
 0x608   :  { %v64_v49 = vld [vmem:[#allocation5 + $0xb0] sm:$0xff] }
 0x60a   :  { %v1355_v51 = vpop.f32.mrb[16].mxu1 }
 0x60b   :  { %v1279_v52 = vpop.f32.mrb[10].mxu0  ;;  %1523 = vrot.lane.b32.xlu1 %v1355_v51, %s2295_s10  ;;  %v2034_v53 = vpop.f32.mrb[17].mxu1  ;;  %v65_v51 = vld [vmem:[#allocation5 + $0xb8] sm:$0xff] }
 0x60c   :  { %1521 = vrot.lane.b32.xlu0 %v1279_v52, %s2295_s10  ;;  %v2029_v54 = vpop.f32.mrb[11].mxu0  ;;  %v2146_v52 = vpack.c.bf16 %v65_v51, %v64_v49  ;;  %v66_v53 = vld [vmem:[#allocation5 + $0xc0] sm:$0xff] }
 0x60d   :  { %v67_v54 = vld [vmem:[#allocation5 + $0xc8] sm:$0xff] }
 0x60e   :  { %v1507_v55 = vpop.f32.mrb[18].mxu1 }
 0x60f   :  { %v1431_v56 = vpop.f32.mrb[12].mxu0  ;;  %1531 = vrot.lane.b32.xlu1 %v1507_v55, %s2296_s11  ;;  %v2044_v57 = vpop.f32.mrb[19].mxu1  ;;  %v2150_v55 = vpack.c.bf16 %v67_v54, %v66_v53 }
 0x610   :  { %1529 = vrot.lane.b32.xlu0 %v1431_v56, %s2296_s11  ;;  %v2039_v58 = vpop.f32.mrb[13].mxu0 }
 0x675   :  { %v1516_v59 = vpop.permute.xlu1 %1515 }
 0x676   :  { %v1536_v63 = vsel %vm208_vm2, %v1051_v35, %v1516_v59  ;;  %v57_v35 = vld [vmem:[#allocation5 + $0x78] sm:$0xff] }
 0x679   :  { %v1514_v60 = vpop.permute.xlu0 %1513 }
 0x67a   :  { %v1535_v0 = vsel %vm208_vm2, %v975_v33, %v1514_v60  ;;  %v56_v33 = vld [vmem:[#allocation5 + $0x70] sm:$0xff] }
 0x67b   :  { %v2130_v36 = vpack.c.bf16 %v57_v35, %v56_v33 }
 0x67d   :  { %v1524_v61 = vpop.permute.xlu1 %1523  ;;  %2131 = vmatprep.subr.bf16.mxu0 %v2130_v36 }
 0x67e   :  { %v1522_v62 = vpop.permute.xlu0 %1521  ;;  %v1539_v1 = vsel %vm1537_vm3, %v1536_v63, %v1524_v61  ;;  %2133 = vmatpush3.bf16.msra.mxu0 %v2130_v36  ;;  %v1664_v63 = vsub.s32 3, %v2347_v26 }
 0x67f   :  { %v1538_v3 = vsel %vm1537_vm3, %v1535_v0, %v1522_v62  ;;  %2135 = vmatprep.subr.bf16.mxu0 %v2134_v42  ;;  %v1658_v62 = vsub.s32 2, %v2347_v26 }
 0x681   :  { %v1532_v2 = vpop.permute.xlu1 %1531  ;;  %v1659_v0 = vrot.slane %v2350_v29, %v1658_v62 }
 0x682   :  { %v1542_v4 = vsel %vm1540_vm4, %v1539_v1, %v1532_v2  ;;  %v1530_v5 = vpop.permute.xlu0 %1529  ;;  %2137 = vmatpush3.bf16.msra.mxu0 %v2134_v42 }
 0x683   :  { %v1541_v6 = vsel %vm1540_vm4, %v1538_v3, %v1530_v5  ;;  %2139 = vmatprep.subr.bf16.mxu0 %v2138_v45  ;;  %v1665_v3 = vrot.slane %v2350_v29, %v1664_v63 }
 0x684   :  { %2053 = vmatprep.mubr.msk.f32.mxu1 %vm71_vm0, %v1541_v6 }
 0x685   :  { %2054 = vmatmul.mubr.msk.f32.vlgmr.msra.gmra.mrb[20].mxu1 %vm71_vm0, %v1542_v4 }
 0x686   :  { %2121 = vmatpush3.bf16.msra.mxu1 %v2118_v25  ;;  %2141 = vmatpush3.bf16.msra.mxu0 %v2138_v45 }
 0x687   :  { %2123 = vmatprep.subr.bf16.mxu1 %v2122_v30  ;;  %2143 = vmatprep.subr.bf16.mxu0 %v2142_v48 }
 0x68a   :  { %2125 = vmatpush3.bf16.msra.mxu1 %v2122_v30  ;;  %2145 = vmatpush3.bf16.msra.mxu0 %v2142_v48 }
 0x68b   :  { %2147 = vmatprep.subr.bf16.mxu0 %v2146_v52 }
 0x68e   :  { %2149 = vmatpush3.bf16.msra.mxu0 %v2146_v52 }
 0x68f   :  { %2151 = vmatprep.subr.bf16.mxu0 %v2150_v55 }
 0x692   :  { %2153 = vmatpush3.bf16.msra.mxu0 %v2150_v55 }
 0x758   :  { %v2055_v9 = vpop.f32.mrb[20].mxu1 }
 0x759   :  { %v1625_v10 = vadd.f32 %v2055_v9, %v1546_v8  ;;  %v1619_v47 = vpop.f32.mrb[21].mxu1 }
 0x75a   :  { %v1620_v50 = vadd.f32 %v1619_v47, %v1546_v8  ;;  %v69_v47 = vld [vmem:[#allocation5 + $0xd8] sm:$0xff] }
 0x75b   :  { %v1629_v11 = vadd.f32 %v1625_v10, %v2359_v40  ;;  %v68_v10 = vld [vmem:[#allocation5 + $0xd0] sm:$0xff] }
 0x75c   :  { %v1628_v12 = vadd.f32 %v1620_v50, %v2355_v38  ;;  %v2154_v50 = vpack.c.bf16 %v69_v47, %v68_v10 }
 0x75d   :  { %v1633_v13 = vsel %vm71_vm0, %v1629_v11, 0.0 }
 0x75e   :  { %1634 = vadd.xlane.f32.xlu1 %v1633_v13  ;;  %v1630_v14 = vsel %vm71_vm0, %v1628_v12, 0.0  ;;  %2155 = vmatprep.subr.bf16.mxu0 %v2154_v50 }
 0x75f   :  { %1631 = vadd.xlane.f32.xlu0 %v1630_v14  ;;  %2157 = vmatpush3.bf16.msra.mxu0 %v2154_v50 }
 0x7eb   :  { %v1635_v15 = vpop.xlane.xlu1 %1634 }
 0x7ec   :  { %v1637_v16 = vmul.f32 0.03125, %v1635_v15  ;;  %v1632_v17 = vpop.xlane.xlu0 %1631 }
 0x7ed   :  { %v1636_v18 = vmul.f32 0.03125, %v1632_v17 }
 0x7ee   :  { %v2533_v19 = vsub.f32 %v1629_v11, %v1637_v16  ;;  %v1670_v11 = vsub.s32 6, %v2347_v26 }
 0x7ef   :  { %v2535_v20 = vsub.f32 %v1628_v12, %v1636_v18 }
 0x7f0   :  { %v1641_v38 = vmul.f32 %v2533_v19, %v2533_v19  ;;  %v1671_v12 = vrot.slane %v2350_v29, %v1670_v11 }
 0x7f1   :  { %v1640_v21 = vmul.f32 %v2535_v20, %v2535_v20 }
 0x7f2   :  { %v1645_v22 = vsel %vm71_vm0, %v1641_v38, 0.0 }
 0x7f3   :  { %v1642_v40 = vsel %vm71_vm0, %v1640_v21, 0.0 }
 0x7f4   :  { %1643 = vadd.xlane.f32.xlu0 %v1642_v40 }
 0x7f8   :  { %1646 = vadd.xlane.f32.xlu0 %v1645_v22 }
 0x881   :  { %v1644_v56 = vpop.xlane.xlu0 %1643 }
 0x882   :  { %v1648_v57 = vmul.f32 0.03125, %v1644_v56 }
 0x884   :  { %v1650_v58 = vadd.f32 1e-05, %v1648_v57 }
 0x885   :  { %v1647_v59 = vpop.xlane.xlu0 %1646 }
 0x886   :  { %2208 = vrsqrt.f32 %v1650_v58  ;;  %v1649_v60 = vmul.f32 0.03125, %v1647_v59 }
 0x888   :  { %v1651_v61 = vadd.f32 1e-05, %v1649_v60 }
 0x88a   :  { %2210 = vrsqrt.f32 %v1651_v61 }
 0x890   :  { %v2209_v1 = vpop.eup %2208 }
 0x891   :  { %v1654_v2 = vmul.f32 %v2209_v1, %v2535_v20 }
 0x893   :  { %v1660_v4 = vmul.f32 %v1659_v0, %v1654_v2 }
 0x894   :  { %v2211_v5 = vpop.eup %2210 }
 0x895   :  { %v1655_v6 = vmul.f32 %v2211_v5, %v2533_v19  ;;  %v1666_v7 = vadd.f32 %v1665_v3, %v1660_v4  ;;  %v1757_v19 = vsub.s32 5, %v2347_v26 }
 0x897   :  { %v1661_v8 = vmul.f32 %v1659_v0, %v1655_v6  ;;  %2064 = vmatprep.mubr.msk.f32.mxu1 %vm71_vm0, %v1666_v7  ;;  %v1758_v20 = vrot.slane %v2350_v29, %v1757_v19 }
 0x899   :  { %v1667_v9 = vadd.f32 %v1665_v3, %v1661_v8 }
 0x89b   :  { %2065 = vmatmul.mubr.msk.f32.vlgmr.msra.gmra.mrb[22].mxu1 %vm71_vm0, %v1667_v9 }
 0x96e   :  { %v2066_v13 = vpop.f32.mrb[22].mxu1 }
 0x96f   :  { %v1750_v14 = vadd.f32 %v2066_v13, %v1671_v12  ;;  %v1744_v15 = vpop.f32.mrb[23].mxu1 }
 0x970   :  { %v1745_v16 = vadd.f32 %v1744_v15, %v1671_v12 }
 0x971   :  { %v1754_v18 = vmax.f32 %v1750_v14, 0.0 }
 0x972   :  { %v1753_v17 = vmax.f32 %v1745_v16, 0.0 }
 0x974   :  { %2099 = vmatprep.mubr.f32.mxu0 %v1753_v17 }
 0x975   :  { %2100 = vmatmul.mubr.f32.vlgmr.msra.gmra.mrb[14].mxu0 %v1754_v18 }
 0xa48   :  { %v2101_v21 = vpop.f32.mrb[14].mxu0 }
 0xa49   :  { %v1831_v40 = vadd.f32 %v2101_v21, %v1758_v20  ;;  %v1825_v38 = vpop.f32.mrb[15].mxu0 }
 0xa4a   :  { %v1826_v22 = vadd.f32 %v1825_v38, %v1758_v20 }
 0xa4b   :  { %v1835_v23 = vadd.f32 %v1831_v40, %v1667_v9 }
 0xa4c   :  { %v1834_v24 = vadd.f32 %v1826_v22, %v1666_v7 }
 0xa4d   :  { %1837 = vst.msk [vmem:[#allocation7 + $0x8] sm:$0xff] %vm71_vm0, %v1835_v23 }
 0xa4e   :  { %1836 = vst.msk [vmem:[#allocation7] sm:$0xff] %vm71_vm0, %v1834_v24 }
 0xa4f   :  { %2267 = shalt.err (!%p2264_p6)
}
 0xa50   :  { %s2268_s17 = scalar_lea.hbm %s2574_s2, 256 }
 0xa51   :  { %p2269_p7 = scmp.ne.s32.totalorder %s2574_s2, %s2268_s17  ;;  %p2272_p8 = scmp.lt.u32.totalorder %s2268_s17, %s2574_s2 }
 0xa53   :  { %p2274_p9 = pnand %p2272_p8, %p2269_p7 }
 0xa55   :  { %2277 = shalt.err (!%p2274_p9)
}
 0xa56   :  { %1849 = dma.vmem_to_hbm [thread:$0]  %s1844_s13, 256, %s2574_s2, [#allocation4], %s2285_s19, %s2285_s19, %s2286_s20  }
 0xa57   :  { %2282 = dma.done.wait [#allocation4], 256  }
 0xa58   :  { %2283 = vsyncadd [#allocation4], 4294967040 }
 0xa59   :  { %1853 = vsyncpa [#allocation3], 1 }
 0xa5a   :  { %1854 = vsyncpa [#allocation6], 1 }
 0xa5b   :  { %1855 = vsyncpa [#allocation4], 1 }

</bundles_post_ra>
